<compile_context>
chip_gen: v7x
topology: tpu7x:2x2x1
jax: 0.10.0
libtpu: 0.0.40
codegen_flags: <defaults>
</compile_context>

<pallas_src>
import functools

import jax
import jax.numpy as jnp
from jax.experimental import pallas as pl
from jax.experimental.pallas import tpu as pltpu

# ---- CONFIG (the torch module reads these from a global CONFIG dict) ----
CONFIG = {
    "ENV_ROW": 3,
    "ENV_DEP": 10,
    "ARGUMENT_NUM": 3,
    "ARGUMENT_DEPTH": 10,
    "PROGRAM_NUM": 16,
    "PROGRAM_KEY_SIZE": 8,
    "PROGRAM_EMBEDDING_SIZE": 32,
}

HIDDEN_DIM = 256   # torch default hidden_dim
STATE_DIM = 128    # torch default state_dim (lane-dense output)

ENV_DIM = CONFIG["ENV_ROW"] * CONFIG["ENV_DEP"]              # 30
ARG_DIM = CONFIG["ARGUMENT_NUM"] * CONFIG["ARGUMENT_DEPTH"]  # 30
IN_DIM = ENV_DIM + ARG_DIM                                   # 60
IN_PAD = 64                                                  # padded concat width
PROGRAM_NUM = CONFIG["PROGRAM_NUM"]
PROGRAM_EMBD = CONFIG["PROGRAM_EMBEDDING_SIZE"]


def _round_up(x, m):
    return ((x + m - 1) // m) * m


def _cdiv(a, b):
    return -(-a // b)


def encoder_kernel(x_ref, w1_ref, b1_ref, w2_ref, b2_ref, w3_ref, b3_ref,
                   out_ref):
    """Fused Linear-ReLU-Linear-ReLU-Linear on one batch tile.

    x is the pre-concatenated, zero-padded (tb, 64) bf16 input.  MXU operands
    are bf16; accumulation, bias add and ReLU stay f32; the final store rounds
    to the output dtype (bf16).
    """
    x = x_ref[...]                                            # (tb, 64) bf16

    h = jnp.dot(x, w1_ref[...], preferred_element_type=jnp.float32) + b1_ref[...]
    h = jnp.maximum(h, 0.0)

    h = jnp.dot(h.astype(jnp.bfloat16), w2_ref[...],
                preferred_element_type=jnp.float32) + b2_ref[...]
    h = jnp.maximum(h, 0.0)

    out = jnp.dot(h.astype(jnp.bfloat16), w3_ref[...],
                  preferred_element_type=jnp.float32) + b3_ref[...]
    out_ref[...] = out.astype(out_ref.dtype)


def _choose_tb(b, tb):
    """Batch tile: multiple of 8, capped so the grid has >=2 steps when the
    batch allows it (megacore sharding on v7x), and never larger than the
    (padded) batch."""
    tb = max(8, (tb // 8) * 8)
    half = _round_up(max(_cdiv(b, 2), 1), 8)
    tb = min(tb, max(8, half))
    tb = min(tb, _round_up(b, 8))
    return tb


@functools.partial(jax.jit, static_argnames=("tb", "out_dtype"))
def revpolish_forward(env_in, arg_in, prg_in, params, tb=2048,
                      out_dtype=jnp.bfloat16):
    """Wrapper: batch-gridded Pallas encoder + wrapper-side embedding gather.

    Mirrors torch:  state_en = encoder(cat([env, arg], 1).float());
                    prg_id_embd = program_embd(prg_in.long()).
    """
    b = env_in.shape[0]

    # Concat + zero-pad to 64 lanes + cast to bf16 on the wrapper side
    # (W1 rows 60:64 are zero, so the padding is exact).
    x = jnp.concatenate(
        [env_in.astype(jnp.float32), arg_in.astype(jnp.float32)], axis=1)
    x = jnp.pad(x, ((0, 0), (0, IN_PAD - IN_DIM))).astype(jnp.bfloat16)

    tb_eff = _choose_tb(b, tb)
    grid = (pl.cdiv(b, tb_eff),)

    flops = 2 * b * (IN_PAD * HIDDEN_DIM
                     + HIDDEN_DIM * HIDDEN_DIM
                     + HIDDEN_DIM * STATE_DIM)
    weight_bytes = sum(int(v.size) * v.dtype.itemsize
                       for k, v in params.items() if k != "embd")
    bytes_accessed = (x.size * x.dtype.itemsize
                      + b * STATE_DIM * jnp.dtype(out_dtype).itemsize
                      + weight_bytes)

    state_en = pl.pallas_call(
        encoder_kernel,
        out_shape=jax.ShapeDtypeStruct((b, STATE_DIM), out_dtype),
        grid=grid,
        in_specs=[
            pl.BlockSpec((tb_eff, IN_PAD), lambda i: (i, 0)),          # x tile
            pl.BlockSpec((IN_PAD, HIDDEN_DIM), lambda i: (0, 0)),      # W1 (padded)
            pl.BlockSpec((1, HIDDEN_DIM), lambda i: (0, 0)),           # b1
            pl.BlockSpec((HIDDEN_DIM, HIDDEN_DIM), lambda i: (0, 0)),  # W2
            pl.BlockSpec((1, HIDDEN_DIM), lambda i: (0, 0)),           # b2
            pl.BlockSpec((HIDDEN_DIM, STATE_DIM), lambda i: (0, 0)),   # W3
            pl.BlockSpec((1, STATE_DIM), lambda i: (0, 0)),            # b3
        ],
        out_specs=pl.BlockSpec((tb_eff, STATE_DIM), lambda i: (i, 0)),
        compiler_params=pltpu.CompilerParams(
            dimension_semantics=("parallel",)),
        cost_estimate=pl.CostEstimate(flops=flops, transcendentals=0,
                                      bytes_accessed=bytes_accessed),
    )(x,
      params["w1"], params["b1"],
      params["w2"], params["b2"],
      params["w3"], params["b3"])

    # Embedding lookup: tiny (16, 32) table -> exact row gather in the wrapper.
    prg_id_embd = jnp.take(params["embd"], prg_in.astype(jnp.int32), axis=0)
    return state_en, prg_id_embd


def init_params(key):
    """Parameter init mimicking torch defaults (shapes only).

    Linear weights are stored as (in, out) so the kernel computes x @ W + b.
    W1 is zero-padded from 60 to 64 input rows to match the padded concat.
    Matmul weights are bf16 (MXU operand dtype); biases and the embedding
    table stay f32.
    """
    ks = jax.random.split(key, 7)

    def lin(kw, kb, fan_in, fan_out):
        bound = 1.0 / jnp.sqrt(jnp.float32(fan_in))
        w = jax.random.uniform(kw, (fan_in, fan_out), jnp.float32, -bound, bound)
        bvec = jax.random.uniform(kb, (1, fan_out), jnp.float32, -bound, bound)
        return w, bvec

    w1, b1 = lin(ks[0], ks[1], IN_DIM, HIDDEN_DIM)
    w1_pad = jnp.pad(w1, ((0, IN_PAD - IN_DIM), (0, 0)))     # zero rows 60:64
    w2, b2 = lin(ks[2], ks[3], HIDDEN_DIM, HIDDEN_DIM)
    w3, b3 = lin(ks[4], ks[5], HIDDEN_DIM, STATE_DIM)
    embd = jax.random.normal(ks[6], (PROGRAM_NUM, PROGRAM_EMBD), jnp.float32)
    return {
        "w1": w1_pad.astype(jnp.bfloat16), "b1": b1,
        "w2": w2.astype(jnp.bfloat16), "b2": b2,
        "w3": w3.astype(jnp.bfloat16), "b3": b3,
        "embd": embd,
    }


def reference_forward(env_in, arg_in, prg_in, p, out_dtype=jnp.bfloat16):
    """Pure-JAX reference with the same bf16-operand / f32-accumulate math."""
    x = jnp.concatenate(
        [env_in.astype(jnp.float32), arg_in.astype(jnp.float32)], axis=1)
    x = jnp.pad(x, ((0, 0), (0, IN_PAD - IN_DIM))).astype(jnp.bfloat16)
    h = jnp.dot(x, p["w1"], preferred_element_type=jnp.float32) + p["b1"]
    h = jnp.maximum(h, 0.0)
    h = jnp.dot(h.astype(jnp.bfloat16), p["w2"],
                preferred_element_type=jnp.float32) + p["b2"]
    h = jnp.maximum(h, 0.0)
    state_en = (jnp.dot(h.astype(jnp.bfloat16), p["w3"],
                        preferred_element_type=jnp.float32)
                + p["b3"]).astype(out_dtype)
    prg_id_embd = p["embd"][prg_in.astype(jnp.int32)]
    return state_en, prg_id_embd


if __name__ == "__main__":
    key = jax.random.PRNGKey(0)
    k_env, k_arg, k_prg, k_par = jax.random.split(key, 4)

    B = 2
    env_in = jax.random.normal(k_env, (B, ENV_DIM), jnp.float32)
    arg_in = jax.random.normal(k_arg, (B, ARG_DIM), jnp.float32)
    prg_in = jax.random.randint(k_prg, (B,), 0, PROGRAM_NUM, jnp.int32)

    params = init_params(k_par)

    state_en, prg_id_embd = revpolish_forward(env_in, arg_in, prg_in, params)
    jax.block_until_ready((state_en, prg_id_embd))

    ref_state, ref_embd = reference_forward(env_in, arg_in, prg_in, params)
    assert state_en.shape == (B, STATE_DIM)
    assert state_en.dtype == jnp.bfloat16
    assert prg_id_embd.shape == (B, PROGRAM_EMBD)
    err = jnp.max(jnp.abs(state_en.astype(jnp.float32)
                          - ref_state.astype(jnp.float32)))
    assert jnp.allclose(state_en.astype(jnp.float32),
                        ref_state.astype(jnp.float32),
                        atol=2e-2, rtol=2e-2), float(err)
    assert jnp.allclose(prg_id_embd, ref_embd, atol=0.0, rtol=0.0)

    print("KERNEL_OK")
</pallas_src>

<mosaic_0001>
module attributes {stable_mosaic.version = 11 : i64} {
  func.func @encoder_kernel(%arg0: i32, %arg1: memref<8x64xbf16, #tpu.memory_space<vmem>>, %arg2: memref<64x256xbf16, #tpu.memory_space<vmem>>, %arg3: memref<1x256xf32, #tpu.memory_space<vmem>>, %arg4: memref<256x256xbf16, #tpu.memory_space<vmem>>, %arg5: memref<1x256xf32, #tpu.memory_space<vmem>>, %arg6: memref<256x128xbf16, #tpu.memory_space<vmem>>, %arg7: memref<1x128xf32, #tpu.memory_space<vmem>>, %arg8: memref<8x128xbf16, #tpu.memory_space<vmem>>) attributes {dimension_semantics = [#tpu.dimension_semantics<parallel>], iteration_bounds = array<i64: 1>, scalar_prefetch = 0 : i64, scratch_operands = 0 : i64, tpu.core_type = #tpu.core_type<tc>, window_params = [{transform_indices = @transform_0, window_bounds = array<i64: 8, 64>}, {pipeline_mode = #tpu.pipeline_mode<synchronous>, transform_indices = @transform_1, window_bounds = array<i64: 64, 256>}, {pipeline_mode = #tpu.pipeline_mode<synchronous>, transform_indices = @transform_2, window_bounds = array<i64: 1, 256>}, {pipeline_mode = #tpu.pipeline_mode<synchronous>, transform_indices = @transform_3, window_bounds = array<i64: 256, 256>}, {pipeline_mode = #tpu.pipeline_mode<synchronous>, transform_indices = @transform_4, window_bounds = array<i64: 1, 256>}, {pipeline_mode = #tpu.pipeline_mode<synchronous>, transform_indices = @transform_5, window_bounds = array<i64: 256, 128>}, {pipeline_mode = #tpu.pipeline_mode<synchronous>, transform_indices = @transform_6, window_bounds = array<i64: 1, 128>}, {transform_indices = @transform_7, window_bounds = array<i64: 8, 128>}]} {
    %c0 = arith.constant 0 : index
    %c0_0 = arith.constant 0 : index
    %0 = vector.load %arg1[%c0, %c0_0] : memref<8x64xbf16, #tpu.memory_space<vmem>>, vector<8x64xbf16>
    %c0_1 = arith.constant 0 : index
    %c0_2 = arith.constant 0 : index
    %1 = vector.load %arg2[%c0_1, %c0_2] : memref<64x256xbf16, #tpu.memory_space<vmem>>, vector<64x256xbf16>
    %cst = arith.constant dense<0.000000e+00> : vector<8x256xf32>
    %2 = tpu.matmul %0, %1, %cst {dimension_numbers = #tpu.dot_dimension_numbers<[1], [0], [0], [1], [0, 0, 1, 1], [], []>} : vector<8x64xbf16>, vector<64x256xbf16>, vector<8x256xf32> -> vector<8x256xf32>
    %c0_3 = arith.constant 0 : index
    %c0_4 = arith.constant 0 : index
    %3 = vector.load %arg3[%c0_3, %c0_4] : memref<1x256xf32, #tpu.memory_space<vmem>>, vector<1x256xf32>
    %4 = vector.broadcast %3 : vector<1x256xf32> to vector<8x256xf32>
    %5 = arith.addf %2, %4 : vector<8x256xf32>
    %cst_5 = arith.constant 0.000000e+00 : f32
    %6 = vector.broadcast %cst_5 : f32 to vector<8x256xf32>
    %7 = arith.maximumf %5, %6 : vector<8x256xf32>
    %8 = arith.truncf %7 : vector<8x256xf32> to vector<8x256xbf16>
    %c0_6 = arith.constant 0 : index
    %c0_7 = arith.constant 0 : index
    %9 = vector.load %arg4[%c0_6, %c0_7] : memref<256x256xbf16, #tpu.memory_space<vmem>>, vector<256x256xbf16>
    %cst_8 = arith.constant dense<0.000000e+00> : vector<8x256xf32>
    %10 = tpu.matmul %8, %9, %cst_8 {dimension_numbers = #tpu.dot_dimension_numbers<[1], [0], [0], [1], [0, 0, 1, 1], [], []>} : vector<8x256xbf16>, vector<256x256xbf16>, vector<8x256xf32> -> vector<8x256xf32>
    %c0_9 = arith.constant 0 : index
    %c0_10 = arith.constant 0 : index
    %11 = vector.load %arg5[%c0_9, %c0_10] : memref<1x256xf32, #tpu.memory_space<vmem>>, vector<1x256xf32>
    %12 = vector.broadcast %11 : vector<1x256xf32> to vector<8x256xf32>
    %13 = arith.addf %10, %12 : vector<8x256xf32>
    %cst_11 = arith.constant 0.000000e+00 : f32
    %14 = vector.broadcast %cst_11 : f32 to vector<8x256xf32>
    %15 = arith.maximumf %13, %14 : vector<8x256xf32>
    %16 = arith.truncf %15 : vector<8x256xf32> to vector<8x256xbf16>
    %c0_12 = arith.constant 0 : index
    %c0_13 = arith.constant 0 : index
    %17 = vector.load %arg6[%c0_12, %c0_13] : memref<256x128xbf16, #tpu.memory_space<vmem>>, vector<256x128xbf16>
    %cst_14 = arith.constant dense<0.000000e+00> : vector<8x128xf32>
    %18 = tpu.matmul %16, %17, %cst_14 {dimension_numbers = #tpu.dot_dimension_numbers<[1], [0], [0], [1], [0, 0, 1, 1], [], []>} : vector<8x256xbf16>, vector<256x128xbf16>, vector<8x128xf32> -> vector<8x128xf32>
    %c0_15 = arith.constant 0 : index
    %c0_16 = arith.constant 0 : index
    %19 = vector.load %arg7[%c0_15, %c0_16] : memref<1x128xf32, #tpu.memory_space<vmem>>, vector<1x128xf32>
    %20 = vector.broadcast %19 : vector<1x128xf32> to vector<8x128xf32>
    %21 = arith.addf %18, %20 : vector<8x128xf32>
    %22 = arith.truncf %21 : vector<8x128xf32> to vector<8x128xbf16>
    %c0_17 = arith.constant 0 : index
    %c0_18 = arith.constant 0 : index
    %23 = vector.load %arg8[%c0_17, %c0_18] : memref<8x128xbf16, #tpu.memory_space<vmem>>, vector<8x128xbf16>
    tpu.vector_store %arg8[%c0_17, %c0_18], %22 {strides = array<i32>} : memref<8x128xbf16, #tpu.memory_space<vmem>>, vector<8x128xbf16>,
    return
  }
  func.func @transform_0(%arg0: i32) -> (i32, i32) {
    %c0_i32 = arith.constant 0 : i32
    %c0_i32_0 = arith.constant 0 : i32
    return %arg0, %c0_i32 : i32, i32
  }
  func.func @transform_1(%arg0: i32) -> (i32, i32) {
    %c0_i32 = arith.constant 0 : i32
    %c0_i32_0 = arith.constant 0 : i32
    %c0_i32_1 = arith.constant 0 : i32
    return %c0_i32, %c0_i32_0 : i32, i32
  }
  func.func @transform_2(%arg0: i32) -> (i32, i32) {
    %c0_i32 = arith.constant 0 : i32
    %c0_i32_0 = arith.constant 0 : i32
    %c0_i32_1 = arith.constant 0 : i32
    return %c0_i32, %c0_i32_0 : i32, i32
  }
  func.func @transform_3(%arg0: i32) -> (i32, i32) {
    %c0_i32 = arith.constant 0 : i32
    %c0_i32_0 = arith.constant 0 : i32
    %c0_i32_1 = arith.constant 0 : i32
    return %c0_i32, %c0_i32_0 : i32, i32
  }
  func.func @transform_4(%arg0: i32) -> (i32, i32) {
    %c0_i32 = arith.constant 0 : i32
    %c0_i32_0 = arith.constant 0 : i32
    %c0_i32_1 = arith.constant 0 : i32
    return %c0_i32, %c0_i32_0 : i32, i32
  }
  func.func @transform_5(%arg0: i32) -> (i32, i32) {
    %c0_i32 = arith.constant 0 : i32
    %c0_i32_0 = arith.constant 0 : i32
    %c0_i32_1 = arith.constant 0 : i32
    return %c0_i32, %c0_i32_0 : i32, i32
  }
  func.func @transform_6(%arg0: i32) -> (i32, i32) {
    %c0_i32 = arith.constant 0 : i32
    %c0_i32_0 = arith.constant 0 : i32
    %c0_i32_1 = arith.constant 0 : i32
    return %c0_i32, %c0_i32_0 : i32, i32
  }
  func.func @transform_7(%arg0: i32) -> (i32, i32) {
    %c0_i32 = arith.constant 0 : i32
    %c0_i32_0 = arith.constant 0 : i32
    return %arg0, %c0_i32 : i32, i32
  }
}

</mosaic_0001>

<bundles_post_ra>
// kernel: revpolish_forward.1
= control target key start
LH: loop header
LB: loop body
LE: loop exit
PB: predicated region body
PF: predicated region fallthrough
CT: control target
= control target key end

     0   :  { %12 = vsyncpa [#allocation3], 0  ;;  %s1091_s0 = inlined_call_operand.vmem [shape: bf16[2,64], index: 0, kind: input, shape index: {}]   ;;  %s1092_s1 = inlined_call_operand.hbm [shape: bf16[64,256], index: 1, kind: input, shape index: {}]   ;;  %s1093_s2 = inlined_call_operand.vmem [shape: f32[1,256], index: 2, kind: input, shape index: {}]   ;;  %s1094_s3 = inlined_call_operand.hbm [shape: bf16[256,256], index: 3, kind: input, shape index: {}]   ;;  %s1095_s4 = inlined_call_operand.vmem [shape: f32[1,256], index: 4, kind: input, shape index: {}]   ;;  %s1096_s5 = inlined_call_operand.hbm [shape: bf16[256,128], index: 5, kind: input, shape index: {}]   ;;  %s1097_s6 = inlined_call_operand.vmem [shape: f32[1,128], index: 6, kind: input, shape index: {}]   ;;  %s1098_s7 = inlined_call_operand.hbm [shape: bf16[2,128], index: 7, kind: output, shape index: {}]  }
   0x1   :  { %13 = vsyncpa [#allocation6], 0 }
   0x2   :  { %14 = vsyncpa [#allocation4], 0  ;;  %s950_s24 = smov [#allocation5]   ;;  %s951_s26 = smov [#allocation2]  }
   0x3   :  { %s36_s25 = sshll.u32 %s950_s24, 4  ;;  %s22_s27 = sshll.u32 %s951_s26, 4  ;;  %s37_s25 = int_to_ptr.vmem [resolvable:$true] %s36_s25  ;;  %s1002_s27 = int_to_ptr.vmem [resolvable:$true] %s22_s27 }
   0x4   :  { %s856_s30 = scalar_lea.hbm %s1094_s3, 4096 }
   0x5   :  { %p857_p0 = scmp.ne.s32.totalorder %s1094_s3, %s856_s30  ;;  %p860_p1 = scmp.lt.u32.totalorder %s856_s30, %s1094_s3 }
   0x7   :  { %p862_p2 = pnand %p860_p1, %p857_p0 }
   0x9   :  { %865 = shalt.err (!%p862_p2)
}
   0xa   :  { %s866_s12 = scalar_lea.vmem %s37_s25, 4096  ;;  %p871_p4 = scmp.lt.s32.totalorder %s37_s25, %s37_s25 }
   0xb   :  { %p867_p3 = scmp.ne.s32.totalorder %s37_s25, %s866_s12  ;;  %p872_p5 = scmp.lt.s32.totalorder %s866_s12, %s866_s12 }
   0xd   :  { %p873_p6 = por %p872_p5, %p871_p4 }
   0xf   :  { %p874_p7 = pnand %p873_p6, %p867_p3 }
  0x11   :  { %877 = shalt.err (!%p874_p7)
}
  0x12   :  { %s952_s13 = smov 128   ;;  %s953_s14 = smov 8  }
  0x13   :  { %42 = dma.hbm_to_vmem [thread:$0]  %s1094_s3, 4096, %s37_s25, [#allocation6], %s952_s13, %s952_s13, %s953_s14  }
  0x14   :  { %s878_s19 = scalar_lea.hbm %s1092_s1, 1024 }
  0x15   :  { %p879_p8 = scmp.ne.s32.totalorder %s1092_s1, %s878_s19  ;;  %p882_p9 = scmp.lt.u32.totalorder %s878_s19, %s1092_s1 }
  0x17   :  { %p884_p10 = pnand %p882_p9, %p879_p8 }
  0x19   :  { %887 = shalt.err (!%p884_p10)
}
  0x1a   :  { %s888_s24 = scalar_lea.vmem %s1002_s27, 1024  ;;  %p893_p12 = scmp.lt.s32.totalorder %s1002_s27, %s1002_s27 }
  0x1b   :  { %p889_p11 = scmp.ne.s32.totalorder %s1002_s27, %s888_s24  ;;  %p894_p13 = scmp.lt.s32.totalorder %s888_s24, %s888_s24 }
  0x1d   :  { %p895_p0 = por %p894_p13, %p893_p12 }
  0x1f   :  { %p896_p1 = pnand %p895_p0, %p889_p11 }
  0x21   :  { %899 = shalt.err (!%p896_p1)
}
  0x22   :  { %28 = dma.hbm_to_vmem [thread:$0]  %s1092_s1, 1024, %s1002_s27, [#allocation3], %s952_s13, %s952_s13, %s953_s14  }
  0x23   :  { %s954_s26 = smov [#allocation7]   ;;  %s900_s8 = scalar_lea.hbm %s1096_s5, 2048 }
  0x24   :  { %s50_s28 = sshll.u32 %s954_s26, 4  ;;  %p901_p2 = scmp.ne.s32.totalorder %s1096_s5, %s900_s8  ;;  %s51_s28 = int_to_ptr.vmem [resolvable:$true] %s50_s28 }
  0x25   :  { %p904_p3 = scmp.lt.u32.totalorder %s900_s8, %s1096_s5 }
  0x27   :  { %p906_p4 = pnand %p904_p3, %p901_p2 }
  0x29   :  { %909 = shalt.err (!%p906_p4)
}
  0x2a   :  { %s910_s15 = scalar_lea.vmem %s51_s28, 2048  ;;  %p915_p6 = scmp.lt.s32.totalorder %s51_s28, %s51_s28 }
  0x2b   :  { %p911_p5 = scmp.ne.s32.totalorder %s51_s28, %s910_s15  ;;  %p916_p7 = scmp.lt.s32.totalorder %s910_s15, %s910_s15 }
  0x2d   :  { %p917_p8 = por %p916_p7, %p915_p6 }
  0x2f   :  { %p918_p9 = pnand %p917_p8, %p911_p5 }
  0x31   :  { %921 = shalt.err (!%p918_p9)
}
  0x32   :  { %s955_s1 = smov 64   ;;  %s956_s27 = smov 4  }
  0x33   :  { %56 = dma.hbm_to_vmem [thread:$0]  %s1096_s5, 2048, %s51_s28, [#allocation6], %s955_s1, %s955_s1, %s956_s27  }
  0x34   :  { %944 = dma.done.wait [#allocation3], 1024  }
  0x35   :  { %945 = vsyncadd [#allocation3], 4294966272 }
  0x36   :  { %946 = dma.done.wait [#allocation6], 6144  }
  0x37   :  { %947 = vsyncadd [#allocation6], 4294961152  ;;  %v957_v0 = vmov 0   ;;  %v83_v1 = vlaneseq  ;;  %v958_v2 = vmov 1966171168   ;;  %vm161_vm0 = vcmask 523264  }
  0x38   :  { %197 = vmatprep.mubr.bf16.mxu0 %v957_v0  ;;  %v100_v3 = vunpack.c.l.s4 %v958_v2  ;;  %v780_v4 = vld [vmem:[#allocation2 + $0x4] ss:$8 sps:$4 sm:$0xff]   ;;  %v782_v7 = vld [vmem:[#allocation2] ss:$8 sps:$4 sm:$0xff]   ;;  %v783_v8 = vld [vmem:[#allocation2 + $0x14] ss:$8 sps:$4 sm:$0xff]  }
  0x39   :  { %v1045_v5 = vshrl.u32 %v83_v1, 7  ;;  %165 = vmatprep.subr.bf16.mxu0 %v780_v4  ;;  %v785_v9 = vld [vmem:[#allocation2 + $0x10] ss:$8 sps:$4 sm:$0xff]   ;;  %v786_v10 = vld [vmem:[#allocation2 + $0x24] ss:$8 sps:$4 sm:$0xff]  }
  0x3a   :  { %v101_v6 = vunpack.c.0.s8 %v100_v3  ;;  %166 = vmatpush1.bf16.msra.mxu0 %v782_v7  ;;  %v788_v12 = vld [vmem:[#allocation2 + $0x20] ss:$8 sps:$4 sm:$0xff]   ;;  %v789_v15 = vld [vmem:[#allocation2 + $0x34] ss:$8 sps:$4 sm:$0xff]   ;;  %v792_v20 = vld [vmem:[#allocation5 + $0x4] ss:$8 sps:$4 sm:$0xff]  }
  0x3b   :  { %167 = vmatprep.subr.bf16.mxu0 %v783_v8  ;;  %v69_v13 = vld [vmem:[%s1091_s0] sm:$0x1]  ;;  %v70_v14 = vld [vmem:[%s1091_s0 + $0x1] sm:$0x1]  ;;  %v71_v16 = vld [vmem:[%s1091_s0 + $0x2] sm:$0x1]  ;;  %414 = vmatprep.subr.bf16.mxu1 %v792_v20 }
  0x3c   :  { %v1048_v11 = vsub.s32 %v101_v6, %v1045_v5  ;;  %v72_v17 = vld [vmem:[%s1091_s0 + $0x3] sm:$0x1]  ;;  %v97_v18 = vcombine.low %v69_v13, %v70_v14  ;;  %v795_v23 = vld [vmem:[#allocation5 + $0x14] ss:$8 sps:$4 sm:$0xff]   ;;  %v797_v25 = vld [vmem:[#allocation5 + $0x10] ss:$8 sps:$4 sm:$0xff]  }
  0x3d   :  { %v98_v19 = vcombine.low %v71_v16, %v72_v17  ;;  %v794_v21 = vld [vmem:[#allocation5] ss:$8 sps:$4 sm:$0xff]   ;;  %v791_v26 = vld [vmem:[#allocation2 + $0x30] ss:$8 sps:$4 sm:$0xff]   ;;  %v798_v28 = vld [vmem:[#allocation5 + $0x24] ss:$8 sps:$4 sm:$0xff]  }
  0x3e   :  { %168 = vmatpush1.bf16.msra.mxu0 %v785_v9  ;;  %v105_v22 = vrot.slane %v97_v18, %v1048_v11  ;;  %415 = vmatpush1.bf16.msra.mxu1 %v794_v21  ;;  %v800_v30 = vld [vmem:[#allocation5 + $0x20] ss:$8 sps:$4 sm:$0xff]   ;;  %v801_v31 = vld [vmem:[#allocation5 + $0x34] ss:$8 sps:$4 sm:$0xff]   ;;  %v803_v32 = vld [vmem:[#allocation5 + $0x30] ss:$8 sps:$4 sm:$0xff]  }
  0x3f   :  { %169 = vmatprep.subr.bf16.mxu0 %v786_v10  ;;  %v112_v24 = vrot.slane %v98_v19, %v1048_v11  ;;  %416 = vmatprep.subr.bf16.mxu1 %v795_v23  ;;  %v804_v33 = vld [vmem:[#allocation5 + $0x44] ss:$8 sps:$4 sm:$0xff]   ;;  %v806_v34 = vld [vmem:[#allocation5 + $0x40] ss:$8 sps:$4 sm:$0xff]   ;;  %v807_v35 = vld [vmem:[#allocation5 + $0x54] ss:$8 sps:$4 sm:$0xff]  }
  0x40   :  { %v809_v36 = vld [vmem:[#allocation5 + $0x50] ss:$8 sps:$4 sm:$0xff]   ;;  %v810_v37 = vld [vmem:[#allocation5 + $0x64] ss:$8 sps:$4 sm:$0xff]   ;;  %v812_v38 = vld [vmem:[#allocation5 + $0x60] ss:$8 sps:$4 sm:$0xff]  }
  0x41   :  { %v113_v27 = vcombine.low %v105_v22, %v112_v24  ;;  %v813_v39 = vld [vmem:[#allocation5 + $0x74] ss:$8 sps:$4 sm:$0xff]   ;;  %v815_v40 = vld [vmem:[#allocation5 + $0x70] ss:$8 sps:$4 sm:$0xff]   ;;  %v816_v41 = vld [vmem:[#allocation5 + $0x84] ss:$8 sps:$4 sm:$0xff]  }
  0x42   :  { %170 = vmatpush1.bf16.msra.mxu0 %v788_v12  ;;  %417 = vmatpush1.bf16.msra.mxu1 %v797_v25  ;;  %v818_v42 = vld [vmem:[#allocation5 + $0x80] ss:$8 sps:$4 sm:$0xff]   ;;  %v819_v43 = vld [vmem:[#allocation5 + $0x94] ss:$8 sps:$4 sm:$0xff]   ;;  %v821_v44 = vld [vmem:[#allocation5 + $0x90] ss:$8 sps:$4 sm:$0xff]  }
  0x43   :  { %171 = vmatprep.subr.bf16.mxu0 %v789_v15  ;;  %v120_v29 = vrot.slane %v113_v27, %v1048_v11  ;;  %418 = vmatprep.subr.bf16.mxu1 %v798_v28  ;;  %v822_v45 = vld [vmem:[#allocation5 + $0xa4] ss:$8 sps:$4 sm:$0xff]   ;;  %v824_v46 = vld [vmem:[#allocation5 + $0xa0] ss:$8 sps:$4 sm:$0xff]   ;;  %v825_v47 = vld [vmem:[#allocation5 + $0xb4] ss:$8 sps:$4 sm:$0xff]  }
  0x44   :  { %v827_v48 = vld [vmem:[#allocation5 + $0xb0] ss:$8 sps:$4 sm:$0xff]   ;;  %v828_v49 = vld [vmem:[#allocation5 + $0xc4] ss:$8 sps:$4 sm:$0xff]   ;;  %v830_v50 = vld [vmem:[#allocation5 + $0xc0] ss:$8 sps:$4 sm:$0xff]  }
  0x45   :  { %v831_v51 = vld [vmem:[#allocation5 + $0xd4] ss:$8 sps:$4 sm:$0xff]   ;;  %v833_v52 = vld [vmem:[#allocation5 + $0xd0] ss:$8 sps:$4 sm:$0xff]   ;;  %v834_v53 = vld [vmem:[#allocation5 + $0xe4] ss:$8 sps:$4 sm:$0xff]  }
  0x46   :  { %172 = vmatpush1.bf16.msra.mxu0 %v791_v26  ;;  %419 = vmatpush1.bf16.msra.mxu1 %v800_v30  ;;  %v836_v54 = vld [vmem:[#allocation5 + $0xe0] ss:$8 sps:$4 sm:$0xff]   ;;  %v837_v55 = vld [vmem:[#allocation5 + $0xf4] ss:$8 sps:$4 sm:$0xff]   ;;  %v839_v56 = vld [vmem:[#allocation5 + $0xf0] ss:$8 sps:$4 sm:$0xff]  }
  0x47   :  { %420 = vmatprep.subr.bf16.mxu1 %v801_v31  ;;  %v840_v57 = vld [vmem:[#allocation7 + $0x40] sm:$0xff]   ;;  %v842_v59 = vld [vmem:[#allocation7 + $0x48] sm:$0xff]   ;;  %v844_v61 = vld [vmem:[#allocation7 + $0x50] sm:$0xff]   ;;  %v85_v6 = vsub.s32 0, %v1045_v5  ;;  %v89_v8 = vsub.s32 1, %v1045_v5 }
  0x48   :  { %v841_v58 = vld [vmem:[#allocation7] sm:$0xff]   ;;  %746 = vmatprep.subr.bf16.mxu0 %v840_v57  ;;  %v843_v60 = vld [vmem:[#allocation7 + $0x8] sm:$0xff]   ;;  %v845_v62 = vld [vmem:[#allocation7 + $0x10] sm:$0xff]  }
  0x49   :  { %694 = vmatmul.mubr.msk.bf16.vlgmr.msra.gmra.mrb[0].mxu0 %vm161_vm0, %v120_v29  ;;  %v846_v63 = vld [vmem:[#allocation7 + $0x58] sm:$0xff]   ;;  %v848_v1 = vld [vmem:[#allocation7 + $0x60] sm:$0xff]   ;;  %v850_v3 = vld [vmem:[#allocation7 + $0x68] sm:$0xff]  }
  0x4a   :  { %421 = vmatpush1.bf16.msra.mxu1 %v803_v32  ;;  %747 = vmatpush3.bf16.msra.mxu0 %v841_v58  ;;  %v847_v0 = vld [vmem:[#allocation7 + $0x18] sm:$0xff]   ;;  %v849_v2 = vld [vmem:[#allocation7 + $0x20] sm:$0xff]   ;;  %v851_v4 = vld [vmem:[#allocation7 + $0x28] sm:$0xff]  }
  0x4b   :  { %422 = vmatprep.subr.bf16.mxu1 %v804_v33  ;;  %748 = vmatprep.subr.bf16.mxu0 %v842_v59  ;;  %v81_v7 = vld [vmem:[%s1093_s2] sm:$0x3]  ;;  %v852_v22 = vld [vmem:[#allocation7 + $0x70] sm:$0xff]   ;;  %v854_v24 = vld [vmem:[#allocation7 + $0x78] sm:$0xff]  }
  0x4c   :  { %v86_v9 = vrot.slane %v81_v7, %v85_v6  ;;  %v90_v10 = vrot.slane %v81_v7, %v89_v8  ;;  %v853_v23 = vld [vmem:[#allocation7 + $0x30] sm:$0xff]   ;;  %v855_v5 = vld [vmem:[#allocation7 + $0x38] sm:$0xff]   ;;  %v242_v25 = vld [vmem:[%s1095_s4] sm:$0x3] }
  0x4d   :  { %v247_v26 = vrot.slane %v242_v25, %v85_v6  ;;  %v251_v27 = vrot.slane %v242_v25, %v89_v8 }
  0x4e   :  { %423 = vmatpush1.bf16.msra.mxu1 %v806_v34  ;;  %749 = vmatpush3.bf16.msra.mxu0 %v843_v60 }
  0x4f   :  { %424 = vmatprep.subr.bf16.mxu1 %v807_v35  ;;  %750 = vmatprep.subr.bf16.mxu0 %v844_v61 }
  0x52   :  { %425 = vmatpush1.bf16.msra.mxu1 %v809_v36  ;;  %751 = vmatpush3.bf16.msra.mxu0 %v845_v62 }
  0x53   :  { %426 = vmatprep.subr.bf16.mxu1 %v810_v37  ;;  %752 = vmatprep.subr.bf16.mxu0 %v846_v63 }
  0x56   :  { %427 = vmatpush1.bf16.msra.mxu1 %v812_v38  ;;  %753 = vmatpush3.bf16.msra.mxu0 %v847_v0 }
  0x57   :  { %428 = vmatprep.subr.bf16.mxu1 %v813_v39  ;;  %754 = vmatprep.subr.bf16.mxu0 %v848_v1  ;;  %v727_v39 = vld [vmem:[%s1097_s6] ss:$0 sm:$0xff] }
  0x5a   :  { %429 = vmatpush1.bf16.msra.mxu1 %v815_v40  ;;  %755 = vmatpush3.bf16.msra.mxu0 %v849_v2 }
  0x5b   :  { %430 = vmatprep.subr.bf16.mxu1 %v816_v41  ;;  %756 = vmatprep.subr.bf16.mxu0 %v850_v3 }
  0x5e   :  { %431 = vmatpush1.bf16.msra.mxu1 %v818_v42  ;;  %757 = vmatpush3.bf16.msra.mxu0 %v851_v4 }
  0x5f   :  { %432 = vmatprep.subr.bf16.mxu1 %v819_v43  ;;  %758 = vmatprep.subr.bf16.mxu0 %v852_v22 }
  0x62   :  { %433 = vmatpush1.bf16.msra.mxu1 %v821_v44  ;;  %759 = vmatpush3.bf16.msra.mxu0 %v853_v23 }
  0x63   :  { %434 = vmatprep.subr.bf16.mxu1 %v822_v45  ;;  %760 = vmatprep.subr.bf16.mxu0 %v854_v24 }
  0x66   :  { %435 = vmatpush1.bf16.msra.mxu1 %v824_v46  ;;  %761 = vmatpush3.bf16.msra.mxu0 %v855_v5 }
  0x67   :  { %436 = vmatprep.subr.bf16.mxu1 %v825_v47 }
  0x6a   :  { %437 = vmatpush1.bf16.msra.mxu1 %v827_v48 }
  0x6b   :  { %438 = vmatprep.subr.bf16.mxu1 %v828_v49 }
  0x6e   :  { %439 = vmatpush1.bf16.msra.mxu1 %v830_v50 }
  0x6f   :  { %440 = vmatprep.subr.bf16.mxu1 %v831_v51 }
  0x72   :  { %441 = vmatpush1.bf16.msra.mxu1 %v833_v52 }
  0x73   :  { %442 = vmatprep.subr.bf16.mxu1 %v834_v53 }
  0x76   :  { %443 = vmatpush1.bf16.msra.mxu1 %v836_v54 }
  0x77   :  { %444 = vmatprep.subr.bf16.mxu1 %v837_v55 }
  0x7a   :  { %445 = vmatpush1.bf16.msra.mxu1 %v839_v56 }
 0x11c   :  { %v199_v12 = vpop.f32.mrb[0].mxu0 }
 0x11d   :  { %v200_v13 = vadd.f32 %v199_v12, %v86_v9  ;;  %v201_v14 = vpop.f32.mrb[1].mxu0 }
 0x11e   :  { %v202_v15 = vadd.f32 %v201_v14, %v90_v10  ;;  %v203_v16 = vpop.f32.mrb[2].mxu0 }
 0x11f   :  { %v206_v17 = vmax.f32 %v200_v13, 0.0  ;;  %v204_v18 = vpop.f32.mrb[3].mxu0 }
 0x120   :  { %v207_v19 = vmax.f32 %v202_v15, 0.0 }
 0x121   :  { %v208_v21 = vpack.c.bf16 %v206_v17, %v206_v17 }
 0x122   :  { %v209_v20 = vpack.c.bf16 %v207_v19, %v207_v19 }
 0x124   :  { %446 = vmatprep.mubr.bf16.mxu1 %v209_v20 }
 0x125   :  { %447 = vmatmul.mubr.bf16.vlgmr.msra.gmra.mrb[0].mxu1 %v208_v21 }
 0x1f8   :  { %v448_v28 = vpop.f32.mrb[0].mxu1 }
 0x1f9   :  { %v449_v29 = vadd.f32 %v448_v28, %v247_v26  ;;  %v450_v30 = vpop.f32.mrb[1].mxu1 }
 0x1fa   :  { %v451_v31 = vadd.f32 %v450_v30, %v251_v27  ;;  %v452_v32 = vpop.f32.mrb[2].mxu1 }
 0x1fb   :  { %v455_v33 = vmax.f32 %v449_v29, 0.0  ;;  %v453_v34 = vpop.f32.mrb[3].mxu1 }
 0x1fc   :  { %v456_v35 = vmax.f32 %v451_v31, 0.0 }
 0x1fd   :  { %v457_v37 = vpack.c.bf16 %v455_v33, %v455_v33 }
 0x1fe   :  { %v458_v36 = vpack.c.bf16 %v456_v35, %v456_v35 }
 0x200   :  { %626 = vmatprep.mubr.bf16.mxu0 %v458_v36 }
 0x201   :  { %627 = vmatmul.mubr.bf16.vlgmr.msra.gmra.mrb[4].mxu0 %v457_v37 }
 0x2d4   :  { %v762_v38 = vpop.f32.mrb[4].mxu0 }
 0x2d5   :  { %v763_v40 = vpop.f32.mrb[5].mxu0 }
 0x2d6   :  { %v764_v41 = vadd.f32 %v763_v40, %v762_v38  ;;  %v765_v42 = vpop.f32.mrb[6].mxu0 }
 0x2d7   :  { %v766_v43 = vpop.f32.mrb[7].mxu0 }
 0x2d8   :  { %v629_v44 = vadd.f32 %v764_v41, %v727_v39 }
 0x2da   :  { %v634_v45 = vpack.c.bf16 %v629_v44, %v629_v44 }
 0x2dc   :  { %v642_v46 = vrot.slane %v634_v45, %v1048_v11 }
 0x2de   :  { %v643_v47 = vcombine.high %v642_v46, %v642_v46  ;;  %v650_v48 = vrot.slane %v642_v46, %v1048_v11  ;;  %744 = vst.sshfl [vmem:[#allocation8] sm:$0x1 pattern:$0x73625140] %v642_v46 }
 0x2e0   :  { %v657_v49 = vrot.slane %v643_v47, %v1048_v11  ;;  %v658_v50 = vcombine.high %v650_v48, %v650_v48  ;;  %745 = vst.sshfl [vmem:[#allocation8 + $0x1] sm:$0x1 pattern:$0x73625140] %v643_v47 }
 0x2e2   :  { %v659_v51 = vcombine.high %v657_v49, %v657_v49  ;;  %666 = vst [vmem:[#allocation8 + $0x2] sm:$0x1] %v658_v50 }
 0x2e4   :  { %667 = vst [vmem:[#allocation8 + $0x3] sm:$0x1] %v659_v51 }
 0x2e5   :  { %672 = vsyncadd [#allocation4], 48  ;;  %s959_s4 = smov [#allocation8]  }
 0x2e6   :  { %s673_s6 = sshll.u32 %s959_s4, 4  ;;  %s674_s6 = int_to_ptr.vmem [resolvable:$true] %s673_s6 }
 0x2e7   :  { %s922_s26 = scalar_lea.vmem %s674_s6, 16  ;;  %s926_s28 = scalar_lea.vmem %s674_s6, 64 }
 0x2e8   :  { %p923_p10 = scmp.ne.s32.totalorder %s674_s6, %s922_s26  ;;  %p927_p11 = scmp.lt.s32.totalorder %s674_s6, %s674_s6 }
 0x2e9   :  { %p928_p12 = scmp.lt.s32.totalorder %s926_s28, %s922_s26 }
 0x2eb   :  { %p929_p13 = por %p928_p12, %p927_p11 }
 0x2ed   :  { %p930_p0 = pnand %p929_p13, %p923_p10 }
 0x2ef   :  { %933 = shalt.err (!%p930_p0)
}
 0x2f0   :  { %s934_s8 = scalar_lea.hbm %s1098_s7, 16 }
 0x2f1   :  { %p935_p1 = scmp.ne.s32.totalorder %s1098_s7, %s934_s8  ;;  %p938_p2 = scmp.lt.u32.totalorder %s934_s8, %s1098_s7 }
 0x2f3   :  { %p940_p3 = pnand %p938_p2, %p935_p1 }
 0x2f5   :  { %943 = shalt.err (!%p940_p3)
}
 0x2f6   :  { %s960_s15 = smov 16   ;;  %s961_s1 = smov 1  }
 0x2f7   :  { %679 = dma.vmem_to_hbm [thread:$0]  %s674_s6, 16, %s1098_s7, [#allocation4], %s960_s15, %s960_s15, %s961_s1  }
 0x2f8   :  { %948 = dma.done.wait [#allocation4], 64  }
 0x2f9   :  { %949 = vsyncadd [#allocation4], 4294967232 }
 0x2fa   :  { %683 = vsyncpa [#allocation3], 1 }
 0x2fb   :  { %684 = vsyncpa [#allocation6], 1 }
 0x2fc   :  { %685 = vsyncpa [#allocation4], 1 }

</bundles_post_ra>
